<compile_context>
chip_gen: v5e
topology: v5e:2x2
jax: 0.10.0
libtpu: 0.0.40
codegen_flags: <defaults>
</compile_context>

<pallas_src>
import functools

import jax
import jax.numpy as jnp
from jax.experimental import pallas as pl
from jax.experimental.pallas import tpu as pltpu


def _round_up(x, m):
    return ((x + m - 1) // m) * m


def _device_config():
    """Generation-aware (num_cores, vmem_budget_bytes, vmem_limit_cap_bytes)."""
    try:
        kind = jax.devices()[0].device_kind.lower()
    except Exception:  # pragma: no cover - defensive
        kind = ""
    is_v7 = "v7" in kind
    num_cores = 2 if is_v7 else 1

    vmem_cap = None
    try:
        vmem_cap = int(pltpu.get_tpu_info().vmem_capacity_bytes)
    except Exception:
        pass
    if vmem_cap is None:
        vmem_cap = (64 << 20) if is_v7 else (128 << 20)

    # Tile budget: ~21 MiB on v7x (64 MiB physical), ~42-48 MiB on v5e/v6e.
    vmem_budget = min(vmem_cap // 3, 48 << 20)
    # Scoped-VMEM limit cap: ~36 MiB on v7x, 64 MiB on 128 MiB parts.
    vmem_limit_cap = min(int(vmem_cap * 0.56), 64 << 20)
    return num_cores, vmem_budget, vmem_limit_cap


def _mlp_kernel(*refs, n_layers):
    # refs = (x_ref, w0, b0, w1, b1, ..., w_{L-1}, b_{L-1}, out_ref)
    x_ref = refs[0]
    out_ref = refs[-1]
    params = refs[1:-1]

    # Cast to bf16 on-chip (in-register); input stays native dtype in HBM.
    x = x_ref[...].astype(jnp.bfloat16)                    # (tm, n_in)
    for l in range(n_layers):
        w = params[2 * l][...]                             # bf16 (n_in_l, n_out_l)
        b = params[2 * l + 1][...]                         # f32  (1, n_out_l)
        acc = jnp.dot(x, w, preferred_element_type=jnp.float32) + b
        if l < n_layers - 1:
            acc = jnp.maximum(acc, 0.0)                    # ReLU (dropout = identity, eval)
            x = acc.astype(jnp.bfloat16)                   # bf16 feed for next MXU pass
        else:
            out_ref[...] = acc.astype(out_ref.dtype)


def prepare_params(weights, biases):
    """One-time conversion (hoisted out of the forward path).

    weights[l]: (N_in_l, N_out_l)  (already transposed from PyTorch layout)
    biases[l]:  (1, N_out_l)
    """
    ws = [jnp.asarray(w, jnp.bfloat16) for w in weights]
    bs = [jnp.asarray(b, jnp.float32).reshape(1, -1) for b in biases]
    return ws, bs


def rnn_projection_forward(inputs, ws, bs, *, input_list_index=-1, tm=8192,
                           out_dtype=None):
    """Eval-mode forward of RNNProjection on the selected input.

    ws/bs must come from prepare_params (bf16 weights, f32 biases).
    """
    X = inputs[input_list_index]
    *lead, n_in = X.shape
    n_layers = len(ws)
    widths = [w.shape[1] for w in ws]
    n_out_final = widths[-1]
    out_dtype = X.dtype if out_dtype is None else out_dtype

    x2d = X.reshape(-1, n_in)                       # native dtype; no extra HBM pass
    M = x2d.shape[0]

    num_cores, vmem_budget, vmem_limit_cap = _device_config()

    in_itemsize = jnp.dtype(X.dtype).itemsize
    out_itemsize = jnp.dtype(out_dtype).itemsize

    def vmem_bytes(t):
        # double-buffered input / output row tiles
        b = 2 * t * n_in * in_itemsize + 2 * t * n_out_final * out_itemsize
        prev = n_in
        for wd in widths:                           # weights (bf16) + biases (f32), 2x buffered
            b += 2 * (prev * wd * 2 + wd * 4)
            prev = wd
        # live activations: f32 acc + bf16 copy for every layer (conservative sum)
        b += t * n_in * 2 + t * sum(widths) * 6
        return b

    # ---- choose the row tile -----------------------------------------------
    tm = max(16, (int(tm) // 16) * 16)              # multiple of 16 (bf16 sublane packing)
    m_pad = _round_up(M, 16)
    tm = min(tm, m_pad)                             # never bigger than needed

    min_steps = 2 * num_cores if num_cores > 1 else 1

    # Grow while it still fits the budget and keeps enough grid steps.
    while (2 * tm <= m_pad
           and vmem_bytes(2 * tm) <= vmem_budget
           and pl.cdiv(M, 2 * tm) >= min_steps):
        tm *= 2
    # Shrink if over budget.
    while tm > 16 and vmem_bytes(tm) > vmem_budget:
        tm = max(16, ((tm // 2) // 16) * 16)
    # Megacore (v7x): make sure each TensorCore gets >= 2 steps.
    if num_cores > 1 and M > 16 * num_cores and pl.cdiv(M, tm) < min_steps:
        tm = max(16, _round_up(pl.cdiv(M, min_steps), 16))

    grid = (pl.cdiv(M, tm),)                        # Pallas masks the partial edge block

    in_specs = [pl.BlockSpec((tm, n_in), lambda i: (i, 0))]
    args = [x2d]
    for w, b in zip(ws, bs):
        in_specs.append(pl.BlockSpec(w.shape, lambda i: (0, 0)))   # resident weight
        in_specs.append(pl.BlockSpec(b.shape, lambda i: (0, 0)))
        args.append(w)
        args.append(b)

    vmem_limit = int(min(max(32 << 20, 2 * vmem_bytes(tm)), vmem_limit_cap))

    out = pl.pallas_call(
        functools.partial(_mlp_kernel, n_layers=n_layers),
        out_shape=jax.ShapeDtypeStruct((M, n_out_final), out_dtype),
        grid=grid,
        in_specs=in_specs,
        # Last block dim == full array dim -> legal without 128-lane padding.
        out_specs=pl.BlockSpec((tm, n_out_final), lambda i: (i, 0)),
        compiler_params=pltpu.CompilerParams(
            dimension_semantics=("parallel",),
            vmem_limit_bytes=vmem_limit),
    )(*args)

    return out.reshape(*lead, n_out_final)


def init_params(key, N_inputs, Ns_hidden, N_outputs):
    """Deterministic nn.Linear-style init: U(-1/sqrt(fan_in), 1/sqrt(fan_in))."""
    Ns_out = list(Ns_hidden) + [N_outputs]
    weights, biases = [], []
    N_in = N_inputs
    for N_out in Ns_out:
        key, kw, kb = jax.random.split(key, 3)
        bound = 1.0 / jnp.sqrt(jnp.float32(N_in))
        # stored directly as (N_in, N_out) == PyTorch (N_out, N_in) transposed
        w = jax.random.uniform(kw, (N_in, N_out), jnp.float32, -bound, bound)
        b = jax.random.uniform(kb, (1, N_out), jnp.float32, -bound, bound)
        weights.append(w)
        biases.append(b)
        N_in = N_out
    return weights, biases


def reference_forward(inputs, weights, biases, input_list_index=-1):
    X = inputs[input_list_index].astype(jnp.float32)
    for l, (w, b) in enumerate(zip(weights, biases)):
        X = X @ w + b
        if l < len(weights) - 1:
            X = jnp.maximum(X, 0.0)
    return X


if __name__ == "__main__":
    # Module config
    N_inputs, Ns_hidden, N_outputs = 32, [64, 32], 16
    FF_dropout = 0.1            # unused at eval time
    input_list_index = -1

    key = jax.random.PRNGKey(0)
    key, k0, k1, k2 = jax.random.split(key, 4)
    weights, biases = init_params(jax.random.PRNGKey(42), N_inputs, Ns_hidden, N_outputs)
    ws, bs = prepare_params(weights, biases)        # one-time bf16/f32 conversion

    # --- small test ----------------------------------------------------------
    B, T = 2, 8
    dummy = jax.random.normal(k0, (B, T, N_inputs), jnp.float32)
    x = jax.random.normal(k1, (B, T, N_inputs), jnp.float32)
    inputs = [dummy, x]

    out = rnn_projection_forward(inputs, ws, bs, input_list_index=input_list_index)
    out = jax.block_until_ready(out)
    ref = reference_forward(inputs, weights, biases, input_list_index)
    assert out.shape == (B, T, N_outputs), out.shape
    err = float(jnp.max(jnp.abs(out - ref)))
    assert jnp.allclose(out, ref, atol=5e-2, rtol=5e-2), err

    # --- second test: non-divisible rows (partial edge block) ----------------
    B2, T2 = 3, 100
    x2 = jax.random.normal(k2, (B2, T2, N_inputs), jnp.float32)
    inputs2 = [x2]
    out2 = rnn_projection_forward(inputs2, ws, bs, input_list_index=input_list_index)
    out2 = jax.block_until_ready(out2)
    ref2 = reference_forward(inputs2, weights, biases, input_list_index)
    assert out2.shape == (B2, T2, N_outputs), out2.shape
    err2 = float(jnp.max(jnp.abs(out2 - ref2)))
    assert jnp.allclose(out2, ref2, atol=5e-2, rtol=5e-2), err2

    print("KERNEL_OK")
</pallas_src>

<mosaic_0001>
module attributes {stable_mosaic.version = 11 : i64} {
  func.func @_mlp_kernel(%arg0: i32, %arg1: memref<16x32xf32, #tpu.memory_space<vmem>>, %arg2: memref<32x64xbf16, #tpu.memory_space<vmem>>, %arg3: memref<1x64xf32, #tpu.memory_space<vmem>>, %arg4: memref<64x32xbf16, #tpu.memory_space<vmem>>, %arg5: memref<1x32xf32, #tpu.memory_space<vmem>>, %arg6: memref<32x16xbf16, #tpu.memory_space<vmem>>, %arg7: memref<1x16xf32, #tpu.memory_space<vmem>>, %arg8: memref<16x16xf32, #tpu.memory_space<vmem>>) attributes {dimension_semantics = [#tpu.dimension_semantics<parallel>], iteration_bounds = array<i64: 1>, scalar_prefetch = 0 : i64, scratch_operands = 0 : i64, tpu.core_type = #tpu.core_type<tc>, window_params = [{transform_indices = @transform_0, window_bounds = array<i64: 16, 32>}, {pipeline_mode = #tpu.pipeline_mode<synchronous>, transform_indices = @transform_1, window_bounds = array<i64: 32, 64>}, {pipeline_mode = #tpu.pipeline_mode<synchronous>, transform_indices = @transform_2, window_bounds = array<i64: 1, 64>}, {pipeline_mode = #tpu.pipeline_mode<synchronous>, transform_indices = @transform_3, window_bounds = array<i64: 64, 32>}, {pipeline_mode = #tpu.pipeline_mode<synchronous>, transform_indices = @transform_4, window_bounds = array<i64: 1, 32>}, {pipeline_mode = #tpu.pipeline_mode<synchronous>, transform_indices = @transform_5, window_bounds = array<i64: 32, 16>}, {pipeline_mode = #tpu.pipeline_mode<synchronous>, transform_indices = @transform_6, window_bounds = array<i64: 1, 16>}, {transform_indices = @transform_7, window_bounds = array<i64: 16, 16>}]} {
    %c0 = arith.constant 0 : index
    %c0_0 = arith.constant 0 : index
    %0 = vector.load %arg1[%c0, %c0_0] : memref<16x32xf32, #tpu.memory_space<vmem>>, vector<16x32xf32>
    %1 = arith.truncf %0 : vector<16x32xf32> to vector<16x32xbf16>
    %c0_1 = arith.constant 0 : index
    %c0_2 = arith.constant 0 : index
    %2 = vector.load %arg2[%c0_1, %c0_2] : memref<32x64xbf16, #tpu.memory_space<vmem>>, vector<32x64xbf16>
    %c0_3 = arith.constant 0 : index
    %c0_4 = arith.constant 0 : index
    %3 = vector.load %arg3[%c0_3, %c0_4] : memref<1x64xf32, #tpu.memory_space<vmem>>, vector<1x64xf32>
    %cst = arith.constant dense<0.000000e+00> : vector<16x64xf32>
    %4 = tpu.matmul %1, %2, %cst {dimension_numbers = #tpu.dot_dimension_numbers<[1], [0], [0], [1], [0, 0, 1, 1], [], []>} : vector<16x32xbf16>, vector<32x64xbf16>, vector<16x64xf32> -> vector<16x64xf32>
    %5 = vector.broadcast %3 : vector<1x64xf32> to vector<16x64xf32>
    %6 = arith.addf %4, %5 : vector<16x64xf32>
    %cst_5 = arith.constant 0.000000e+00 : f32
    %7 = vector.broadcast %cst_5 : f32 to vector<16x64xf32>
    %8 = arith.maximumf %6, %7 : vector<16x64xf32>
    %9 = arith.truncf %8 : vector<16x64xf32> to vector<16x64xbf16>
    %c0_6 = arith.constant 0 : index
    %c0_7 = arith.constant 0 : index
    %10 = vector.load %arg4[%c0_6, %c0_7] : memref<64x32xbf16, #tpu.memory_space<vmem>>, vector<64x32xbf16>
    %c0_8 = arith.constant 0 : index
    %c0_9 = arith.constant 0 : index
    %11 = vector.load %arg5[%c0_8, %c0_9] : memref<1x32xf32, #tpu.memory_space<vmem>>, vector<1x32xf32>
    %cst_10 = arith.constant dense<0.000000e+00> : vector<16x32xf32>
    %12 = tpu.matmul %9, %10, %cst_10 {dimension_numbers = #tpu.dot_dimension_numbers<[1], [0], [0], [1], [0, 0, 1, 1], [], []>} : vector<16x64xbf16>, vector<64x32xbf16>, vector<16x32xf32> -> vector<16x32xf32>
    %13 = vector.broadcast %11 : vector<1x32xf32> to vector<16x32xf32>
    %14 = arith.addf %12, %13 : vector<16x32xf32>
    %cst_11 = arith.constant 0.000000e+00 : f32
    %15 = vector.broadcast %cst_11 : f32 to vector<16x32xf32>
    %16 = arith.maximumf %14, %15 : vector<16x32xf32>
    %17 = arith.truncf %16 : vector<16x32xf32> to vector<16x32xbf16>
    %c0_12 = arith.constant 0 : index
    %c0_13 = arith.constant 0 : index
    %18 = vector.load %arg6[%c0_12, %c0_13] : memref<32x16xbf16, #tpu.memory_space<vmem>>, vector<32x16xbf16>
    %c0_14 = arith.constant 0 : index
    %c0_15 = arith.constant 0 : index
    %19 = vector.load %arg7[%c0_14, %c0_15] : memref<1x16xf32, #tpu.memory_space<vmem>>, vector<1x16xf32>
    %cst_16 = arith.constant dense<0.000000e+00> : vector<16x16xf32>
    %20 = tpu.matmul %17, %18, %cst_16 {dimension_numbers = #tpu.dot_dimension_numbers<[1], [0], [0], [1], [0, 0, 1, 1], [], []>} : vector<16x32xbf16>, vector<32x16xbf16>, vector<16x16xf32> -> vector<16x16xf32>
    %21 = vector.broadcast %19 : vector<1x16xf32> to vector<16x16xf32>
    %22 = arith.addf %20, %21 : vector<16x16xf32>
    %c0_17 = arith.constant 0 : index
    %c0_18 = arith.constant 0 : index
    %23 = vector.load %arg8[%c0_17, %c0_18] : memref<16x16xf32, #tpu.memory_space<vmem>>, vector<16x16xf32>
    tpu.vector_store %arg8[%c0_17, %c0_18], %22 {strides = array<i32>} : memref<16x16xf32, #tpu.memory_space<vmem>>, vector<16x16xf32>,
    return
  }
  func.func @transform_0(%arg0: i32) -> (i32, i32) {
    %c0_i32 = arith.constant 0 : i32
    %c0_i32_0 = arith.constant 0 : i32
    return %arg0, %c0_i32 : i32, i32
  }
  func.func @transform_1(%arg0: i32) -> (i32, i32) {
    %c0_i32 = arith.constant 0 : i32
    %c0_i32_0 = arith.constant 0 : i32
    %c0_i32_1 = arith.constant 0 : i32
    return %c0_i32, %c0_i32_0 : i32, i32
  }
  func.func @transform_2(%arg0: i32) -> (i32, i32) {
    %c0_i32 = arith.constant 0 : i32
    %c0_i32_0 = arith.constant 0 : i32
    %c0_i32_1 = arith.constant 0 : i32
    return %c0_i32, %c0_i32_0 : i32, i32
  }
  func.func @transform_3(%arg0: i32) -> (i32, i32) {
    %c0_i32 = arith.constant 0 : i32
    %c0_i32_0 = arith.constant 0 : i32
    %c0_i32_1 = arith.constant 0 : i32
    return %c0_i32, %c0_i32_0 : i32, i32
  }
  func.func @transform_4(%arg0: i32) -> (i32, i32) {
    %c0_i32 = arith.constant 0 : i32
    %c0_i32_0 = arith.constant 0 : i32
    %c0_i32_1 = arith.constant 0 : i32
    return %c0_i32, %c0_i32_0 : i32, i32
  }
  func.func @transform_5(%arg0: i32) -> (i32, i32) {
    %c0_i32 = arith.constant 0 : i32
    %c0_i32_0 = arith.constant 0 : i32
    %c0_i32_1 = arith.constant 0 : i32
    return %c0_i32, %c0_i32_0 : i32, i32
  }
  func.func @transform_6(%arg0: i32) -> (i32, i32) {
    %c0_i32 = arith.constant 0 : i32
    %c0_i32_0 = arith.constant 0 : i32
    %c0_i32_1 = arith.constant 0 : i32
    return %c0_i32, %c0_i32_0 : i32, i32
  }
  func.func @transform_7(%arg0: i32) -> (i32, i32) {
    %c0_i32 = arith.constant 0 : i32
    %c0_i32_0 = arith.constant 0 : i32
    return %arg0, %c0_i32 : i32, i32
  }
}

</mosaic_0001>

<bundles_post_ra>
// kernel: tpu_custom_call.1
= control target key start
LH: loop header
LB: loop body
LE: loop exit
PB: predicated region body
PF: predicated region fallthrough
CT: control target
= control target key end

     0   :  { %s349_s0 = inlined_call_operand.vmem [shape: f32[16,32], index: 0, kind: input, shape index: {}]   ;;  %s350_s1 = inlined_call_operand.vmem [shape: bf16[32,64], index: 1, kind: input, shape index: {}]   ;;  %s351_s2 = inlined_call_operand.vmem [shape: f32[1,64], index: 2, kind: input, shape index: {}]   ;;  %s352_s3 = inlined_call_operand.vmem [shape: bf16[64,32], index: 3, kind: input, shape index: {}]   ;;  %s353_s4 = inlined_call_operand.vmem [shape: f32[1,32], index: 4, kind: input, shape index: {}]   ;;  %s354_s5 = inlined_call_operand.vmem [shape: bf16[32,16], index: 5, kind: input, shape index: {}]   ;;  %s355_s6 = inlined_call_operand.vmem [shape: f32[1,16], index: 6, kind: input, shape index: {}]   ;;  %s356_s7 = inlined_call_operand.hbm [shape: f32[16,16], index: 7, kind: output, shape index: {}]  }
   0x1   :  { %v223_v0 = vld [vmem:[%s350_s1 + $0x8] sm:$0xff]  ;;  %v222_v1 = vld [vmem:[%s350_s1] sm:$0xff] }
   0x2   :  { %v28_v2 = vld [vmem:[%s349_s0] sm:$0xff]  ;;  %v29_v3 = vld [vmem:[%s349_s0 + $0x8] sm:$0xff]  ;;  %61 = vmatpush.bf16.msra.mxu0 %v223_v0 }
   0x3   :  { %12 = vsyncpa [#allocation3], 0  ;;  %v30_v4 = vpack.c.bf16 %v29_v3, %v28_v2  ;;  %vm51_vm0 = vcmask 261120   ;;  %v227_v5 = vld [vmem:[%s352_s3 + $0x18] sm:$0xff]  ;;  %v226_v6 = vld [vmem:[%s352_s3 + $0x10] sm:$0xff]  ;;  %vm108_vm1 = vcmask 523264  }
   0x4   :  { %116 = vmatpush.bf16.msra.mxu1 %v227_v5  ;;  %v225_v7 = vld [vmem:[%s352_s3 + $0x8] sm:$0xff]  ;;  %v224_v8 = vld [vmem:[%s352_s3] sm:$0xff]  ;;  %vm166_vm2 = vcmask 130048   ;;  %s175_s25 = sshll.u32 %s356_s7, 4  ;;  %s263_s26 = smov 128   ;;  %s176_s25 = int_to_ptr.hbm [resolvable:$true] %s175_s25 }
   0x5   :  { %v233_v10 = vld [vmem:[%s351_s2] ss:$0 sm:$0xff]  ;;  %v229_v17 = vld [vmem:[%s354_s5 + $0x8] sm:$0xff]  ;;  %s264_s27 = smov 8  }
   0x6   :  { %62 = vmatpush.bf16.msra.mxu0 %v222_v1  ;;  %158 = vmatpush.bf16.msra.mxu2 %v229_v17  ;;  %v228_v18 = vld [vmem:[%s354_s5] sm:$0xff]  ;;  %s262_s5 = smov [#allocation2]  }
   0x7   :  { %v234_v20 = vld [vmem:[%s353_s4] ss:$0 sm:$0xff]  ;;  %s173_s23 = sshll.u32 %s262_s5, 4  ;;  %s174_s23 = int_to_ptr.vmem [resolvable:$true] %s173_s23 }
   0x8   :  { %117 = vmatpush.bf16.msra.mxu1 %v226_v6  ;;  %v235_v27 = vld [vmem:[%s355_s6] ss:$0 sm:$0xff] }
   0x9   :  { %195 = vmatmul.msk.bf16.vlgmr.msra.gmra.mxu0 %vm51_vm0, %v30_v4 }
   0xa   :  { %159 = vmatpush.bf16.msra.mxu2 %v228_v18 }
   0xc   :  { %118 = vmatpush.bf16.msra.mxu1 %v225_v7 }
  0x10   :  { %119 = vmatpush.bf16.msra.mxu1 %v224_v8 }
  0x86   :  { %v64_v9 = vpop.f32.mrf.mxu0 }
  0x87   :  { %v65_v11 = vadd.f32 %v233_v10, %v64_v9 }
  0x89   :  { %v69_v14 = vmax.f32 %v65_v11, 0.0 }
  0x8e   :  { %v66_v12 = vpop.f32.mrf.mxu0 }
  0x8f   :  { %v67_v13 = vadd.f32 %v233_v10, %v66_v12 }
  0x91   :  { %v70_v15 = vmax.f32 %v67_v13, 0.0 }
  0x93   :  { %v71_v16 = vpack.c.bf16 %v70_v15, %v69_v14 }
  0x95   :  { %212 = vmatmul.msk.bf16.vlgmr.msra.gmra.mxu1 %vm108_vm1, %v71_v16 }
 0x112   :  { %v121_v19 = vpop.f32.mrf.mxu1 }
 0x113   :  { %v122_v21 = vadd.f32 %v234_v20, %v121_v19 }
 0x115   :  { %v126_v24 = vmax.f32 %v122_v21, 0.0 }
 0x11a   :  { %v123_v22 = vpop.f32.mrf.mxu1 }
 0x11b   :  { %v124_v23 = vadd.f32 %v234_v20, %v123_v22 }
 0x11d   :  { %v127_v25 = vmax.f32 %v124_v23, 0.0 }
 0x11f   :  { %v128_v26 = vpack.c.bf16 %v127_v25, %v126_v24 }
 0x121   :  { %221 = vmatmul.msk.bf16.vlgmr.msra.gmra.mxu2 %vm51_vm0, %v128_v26 }
 0x1a4   :  { %v161_v28 = vpop.f32.mrf.mxu2 }
 0x1a5   :  { %v162_v29 = vadd.f32 %v235_v27, %v161_v28 }
 0x1a7   :  { %167 = vst.msk [vmem:[#allocation2] sm:$0xff] %vm166_vm2, %v162_v29 }
 0x1ac   :  { %v163_v30 = vpop.f32.mrf.mxu2 }
 0x1ad   :  { %v164_v31 = vadd.f32 %v235_v27, %v163_v30 }
 0x1af   :  { %168 = vst.msk [vmem:[#allocation2 + $0x8] sm:$0xff] %vm166_vm2, %v164_v31 }
 0x1b0   :  { %181 = dma.vmem_to_hbm [thread:$0]  %s174_s23, 256, %s176_s25, [#allocation3], %s263_s26, %s263_s26, %s264_s27  }
 0x1b1   :  { %260 = dma.done.wait [#allocation3], 256  }
 0x1b2   :  { %261 = vsyncadd [#allocation3], 4294967040 }
 0x1b3   :  { %186 = vsyncpa [#allocation3], 1 }

</bundles_post_ra>
